<compile_context>
chip_gen: v7x
topology: tpu7x:2x2x1
jax: 0.10.0
libtpu: 0.0.40
codegen_flags: <defaults>
</compile_context>

<pallas_src>
import math
import numpy as np
import jax
import jax.numpy as jnp
from jax.experimental import pallas as pl
from jax.experimental.pallas import tpu as pltpu


# ----------------------------------------------------------------------------
# Deterministic "config" (stands in for cfg.loss.tone.*)
# ----------------------------------------------------------------------------
DIST_LOSS_WEIGHT = 0.5          # cfg.loss.tone.dist_loss_weight
KERNEL_BLUR = 3                 # cfg.loss.tone.pixel_dist_kernel_blur (odd)
SIGMA = 1.0                     # cfg.loss.tone.pixel_dist_sigma


def _gaussian_kernel1d(kernel_size: int, sigma: float) -> np.ndarray:
    # Matches torchvision's _get_gaussian_kernel1d
    half = (kernel_size - 1) * 0.5
    x = np.linspace(-half, half, kernel_size)
    pdf = np.exp(-0.5 * (x / sigma) ** 2)
    return (pdf / pdf.sum()).astype(np.float32)


W1D = tuple(float(w) for w in _gaussian_kernel1d(KERNEL_BLUR, SIGMA))
PAD = KERNEL_BLUR // 2


# ----------------------------------------------------------------------------
# Generation-aware VMEM budget (v5e/v6e: 128 MiB, v7x: 64 MiB per TensorCore)
# ----------------------------------------------------------------------------
def _detect_vmem_limit() -> int:
    cap = None
    try:
        info = pltpu.get_tpu_info()
        for name in ("vmem_capacity_bytes", "vmem_bytes", "vmem_size_bytes"):
            cap = getattr(info, name, None)
            if cap:
                break
    except Exception:
        cap = None
    if not cap:
        cap = 64 * 1024 * 1024          # conservative fallback (v7x-sized)
    cap = int(cap)
    # 3/4 of physical: ~96 MiB on 128-MiB parts, ~48 MiB on v7x.
    return max((cap * 3) // 4, 32 * 1024 * 1024)


_VMEM_LIMIT = _detect_vmem_limit()
# Per-pipeline-buffer block budget: the loss kernel holds 2 inputs x 2 pipeline
# buffers plus a few f32 block-sized temporaries during the blur, so /10 of the
# limit keeps total residency comfortably under vmem_limit_bytes.
_BLOCK_BUDGET = _VMEM_LIMIT // 10


# ----------------------------------------------------------------------------
# In-kernel blur helpers
# ----------------------------------------------------------------------------
def _blur_pass_pad1(x, weights, axis):
    """One separable 3-tap blur pass with reflect padding (pad=1) along `axis`.

    Tap shifts use pltpu.roll (XLU slot, free next to the VPU adds); the two
    edge columns/rows get their reflected value via an iota mask + jnp.where.
    Upcasts to f32 per-tap (no full-block f32 copy of a bf16 input).
    """
    ax = axis % x.ndim
    n = x.shape[ax]
    idx = jax.lax.broadcasted_iota(jnp.int32, x.shape, ax)
    r_prev = pltpu.roll(x, 1, ax)        # value at j: x[j-1]  (wraps at j=0)
    r_next = pltpu.roll(x, n - 1, ax)    # value at j: x[j+1]  (wraps at j=n-1)
    t_m1 = jnp.where(idx == 0, r_next, r_prev)       # reflect: x[1]   at j=0
    t_p1 = jnp.where(idx == n - 1, r_prev, r_next)   # reflect: x[n-2] at j=n-1
    return (weights[0] * t_m1.astype(jnp.float32)
            + weights[1] * x.astype(jnp.float32)
            + weights[2] * t_p1.astype(jnp.float32))


def _reflect_pad(x, pad, axis):
    """Concat-based reflect pad (general-pad fallback path only)."""
    if pad == 0:
        return x
    n = x.shape[axis]

    def sl(idx):
        if axis == -1:
            return x[..., idx:idx + 1]
        return x[..., idx:idx + 1, :]

    left = [sl(pad - i) for i in range(pad)]
    right = [sl(n - 2 - i) for i in range(pad)]
    return jnp.concatenate(left + [x] + right, axis=axis)


def _blur_block_concat(x, weights, pad):
    """General odd-kernel separable blur (concat fallback, f32 input)."""
    h, w = x.shape[-2], x.shape[-1]
    xw = _reflect_pad(x, pad, axis=-1)
    tmp = weights[0] * xw[..., 0:w]
    for k in range(1, len(weights)):
        tmp = tmp + weights[k] * xw[..., k:k + w]
    th = _reflect_pad(tmp, pad, axis=-2)
    out = weights[0] * th[..., 0:h, :]
    for k in range(1, len(weights)):
        out = out + weights[k] * th[..., k:k + h, :]
    return out


def _blur_block(x, weights, pad):
    """Separable Gaussian blur of a (PB, H, W) block -> f32, reflect padding fused."""
    if pad == 1 and len(weights) == 3:
        tmp = _blur_pass_pad1(x, weights, axis=x.ndim - 1)   # horizontal (lanes)
        return _blur_pass_pad1(tmp, weights, axis=x.ndim - 2)  # vertical (sublanes)
    return _blur_block_concat(x.astype(jnp.float32), weights, pad)


# ----------------------------------------------------------------------------
# Pallas kernels
# ----------------------------------------------------------------------------
def _blur_kernel(x_ref, o_ref):
    """Gaussian blur of a (PB, H, W) plane block (reflect padding fused)."""
    o_ref[...] = _blur_block(x_ref[...], W1D, PAD).astype(o_ref.dtype)


def _make_tone_loss_kernel(acc_rows):
    """Loss kernel factory; grid = (split [parallel], plane-block [arbitrary])."""

    def kernel(x_ref, init_ref, out_ref, acc_ref):
        i = pl.program_id(1)

        @pl.when(i == 0)
        def _init():
            acc_ref[...] = jnp.zeros_like(acc_ref)

        blurred = _blur_block(x_ref[...], W1D, PAD)              # f32
        d = init_ref[...].astype(jnp.float32) - blurred
        sq = d * d
        pb, h, w = sq.shape
        # Sublane-preserving fold: (pb, H, W) -> (pb*H/acc_rows, acc_rows, W);
        # summing the leading axis is pure VPU vreg adds (no XLU), and the
        # accumulator stays a small (acc_rows, W) slab in VMEM scratch.
        sq = sq.reshape((pb * h) // acc_rows, acc_rows, w)
        acc_ref[...] += jnp.sum(sq, axis=0)

        @pl.when(i == pl.num_programs(1) - 1)
        def _finalize():
            # One XLU reduction per split; splat to a lane-dense (1,128) block
            # so the store is an unmasked vst.
            out_ref[...] = jnp.broadcast_to(jnp.sum(acc_ref[...]), (1, 128))

    return kernel


# ----------------------------------------------------------------------------
# Wrappers (reshapes, block selection, scheduler)
# ----------------------------------------------------------------------------
def _choose_plane_block(num_planes, h, w, itemsize, budget_bytes, max_pb=None):
    """Largest divisor of num_planes (<= max_pb) whose block fits the budget."""
    if max_pb is None:
        max_pb = num_planes
    plane_bytes = h * w * max(int(itemsize), 4)   # f32 accounting (blur temps are f32)
    for pb in range(min(num_planes, max_pb), 0, -1):
        if num_planes % pb == 0 and pb * plane_bytes <= budget_bytes:
            return pb
    # TODO(synk): for planes too large for VMEM even at pb=1 (e.g. 4K f32 rasters
    # on v7x's 64 MiB VMEM), switch to row-block tiling with a PAD-row halo.
    return 1


def gaussian_blur_nchw(x, block_budget_bytes=None):
    """GaussianBlur on an NCHW tensor via the Pallas blur kernel."""
    N, C, H, W = x.shape
    assert H >= KERNEL_BLUR and W >= KERNEL_BLUR, "plane smaller than blur kernel"
    B = N * C
    planes = x.reshape(B, H, W)
    budget = _BLOCK_BUDGET if block_budget_bytes is None else block_budget_bytes
    # Cap the plane block so the "parallel" grid has >= 2 steps: on v7x this lets
    # megacore sharding put work on both TensorCores (no-op on v5e/v6e).
    max_pb = B // 2 if B >= 2 else B
    pb = _choose_plane_block(B, H, W, planes.dtype.itemsize, budget, max_pb)
    nbytes = int(planes.size) * planes.dtype.itemsize
    blurred = pl.pallas_call(
        _blur_kernel,
        out_shape=jax.ShapeDtypeStruct((B, H, W), x.dtype),
        grid=(B // pb,),
        in_specs=[pl.BlockSpec((pb, H, W), lambda i: (i, 0, 0))],
        out_specs=pl.BlockSpec((pb, H, W), lambda i: (i, 0, 0)),
        compiler_params=pltpu.CompilerParams(
            dimension_semantics=("parallel",),
            vmem_limit_bytes=_VMEM_LIMIT),
        cost_estimate=pl.CostEstimate(
            flops=int(4 * KERNEL_BLUR * B * H * W),
            transcendentals=0,
            bytes_accessed=int(2 * nbytes)),
    )(planes)
    return blurred.reshape(N, C, H, W)


def get_scheduler(step=None, peak=(300, 700, 900)):
    if step is not None:
        schedule = 0.0
        for p in peak:
            schedule += DIST_LOSS_WEIGHT * math.exp(
                -(1.0 / 5.0) * ((step - p) / 20.0) ** 2)
        return schedule
    return DIST_LOSS_WEIGHT


def set_image_init(im_init_hwc):
    """im_init.permute(2,0,1).unsqueeze(0) then GaussianBlur."""
    im = jnp.transpose(im_init_hwc, (2, 0, 1))[None]          # (1, C, H, W)
    # TODO(synk): PIL image save of the blurred init ('tmp.png') is host file I/O, not implemented.
    return gaussian_blur_nchw(im)


def tone_loss_forward(cur_raster, init_blurred, step=None, block_budget_bytes=None):
    """ToneLoss.forward: MSE(init_blurred, blur(cur_raster)) * scheduler."""
    assert cur_raster.shape == init_blurred.shape
    N, C, H, W = cur_raster.shape
    assert H >= KERNEL_BLUR and W >= KERNEL_BLUR, "plane smaller than blur kernel"
    B = N * C
    cur_planes = cur_raster.reshape(B, H, W)
    init_planes = init_blurred.reshape(B, H, W)
    budget = _BLOCK_BUDGET if block_budget_bytes is None else block_budget_bytes

    # Leading "parallel" split axis: on v7x each TensorCore streams half the
    # planes and emits its own partial sum; single-TC chips run splits serially.
    nsplit = 2 if (B % 2 == 0 and B >= 2) else 1
    per_split = B // nsplit
    itemsize = max(cur_planes.dtype.itemsize, init_planes.dtype.itemsize, 4)
    pb = _choose_plane_block(per_split, H, W, itemsize, budget)
    steps = per_split // pb
    acc_rows = 8 if H % 8 == 0 else H

    in_map = lambda s, i: (s * steps + i, 0, 0)
    in_bytes = (int(cur_planes.size) * cur_planes.dtype.itemsize
                + int(init_planes.size) * init_planes.dtype.itemsize)

    # TODO(synk): PIL image save of blurred_cur ('tmp2.png') is host file I/O, not implemented.
    out = pl.pallas_call(
        _make_tone_loss_kernel(acc_rows),
        out_shape=jax.ShapeDtypeStruct((1, nsplit * 128), jnp.float32),
        grid=(nsplit, steps),
        in_specs=[pl.BlockSpec((pb, H, W), in_map),
                  pl.BlockSpec((pb, H, W), in_map)],
        out_specs=pl.BlockSpec((1, 128), lambda s, i: (0, s)),
        scratch_shapes=[pltpu.VMEM((acc_rows, W), jnp.float32)],
        compiler_params=pltpu.CompilerParams(
            dimension_semantics=("parallel", "arbitrary"),
            vmem_limit_bytes=_VMEM_LIMIT),
        cost_estimate=pl.CostEstimate(
            flops=int((4 * KERNEL_BLUR + 4) * B * H * W),
            transcendentals=0,
            bytes_accessed=int(in_bytes + nsplit * 128 * 4)),
    )(cur_planes, init_planes)

    partials = out.reshape(nsplit, 128)[:, 0]        # each lane holds the same partial
    mse = jnp.sum(partials) / jnp.float32(B * H * W)
    return mse * get_scheduler(step)


# ----------------------------------------------------------------------------
# Pure-JAX reference (independent path via lax.conv) for sanity checks
# ----------------------------------------------------------------------------
def _ref_blur_nchw(x):
    k1d = jnp.asarray(W1D, jnp.float32)
    k2d = jnp.outer(k1d, k1d)[None, None]                      # (1,1,K,K)
    N, C, H, W = x.shape
    xr = x.reshape(N * C, 1, H, W).astype(jnp.float32)
    xpad = jnp.pad(xr, ((0, 0), (0, 0), (PAD, PAD), (PAD, PAD)), mode="reflect")
    out = jax.lax.conv_general_dilated(xpad, k2d, (1, 1), "VALID")
    return out.reshape(N, C, H, W)


def _ref_forward(cur, init_blurred, step):
    return jnp.mean((init_blurred - _ref_blur_nchw(cur)) ** 2) * get_scheduler(step)


if __name__ == "__main__":
    key = jax.random.PRNGKey(0)
    k1, k2 = jax.random.split(key)

    N, C, H, W = 1, 4, 16, 16
    im_init_hwc = jax.random.uniform(k1, (H, W, C), jnp.float32)    # HWC image
    cur_raster = jax.random.uniform(k2, (N, C, H, W), jnp.float32)  # NCHW raster

    # Pallas path (default budget: 2 parallel splits x 1 accumulation step each)
    init_blurred = set_image_init(im_init_hwc)
    loss = jax.block_until_ready(
        tone_loss_forward(cur_raster, init_blurred, step=250))

    # Also exercise the multi-step accumulator path (one plane per grid step).
    loss_small_blocks = jax.block_until_ready(
        tone_loss_forward(cur_raster, init_blurred, step=250,
                          block_budget_bytes=H * W * 4))

    # Reference checks
    ref_blur = jax.block_until_ready(
        _ref_blur_nchw(jnp.transpose(im_init_hwc, (2, 0, 1))[None]))
    np.testing.assert_allclose(np.asarray(init_blurred), np.asarray(ref_blur),
                               rtol=1e-5, atol=1e-6)

    ref = jax.block_until_ready(_ref_forward(cur_raster, init_blurred, 250))
    np.testing.assert_allclose(np.asarray(loss), np.asarray(ref),
                               rtol=1e-5, atol=1e-6)
    np.testing.assert_allclose(np.asarray(loss_small_blocks), np.asarray(ref),
                               rtol=1e-5, atol=1e-6)
    print("KERNEL_OK")
</pallas_src>

<mosaic_0001>
module attributes {stable_mosaic.version = 11 : i64} {
  func.func @_blur_kernel(%arg0: i32, %arg1: memref<2x16x16xf32, #tpu.memory_space<vmem>>, %arg2: memref<2x16x16xf32, #tpu.memory_space<vmem>>) attributes {dimension_semantics = [#tpu.dimension_semantics<parallel>], iteration_bounds = array<i64: 2>, scalar_prefetch = 0 : i64, scratch_operands = 0 : i64, tpu.core_type = #tpu.core_type<tc>, window_params = [{transform_indices = @transform_0, window_bounds = array<i64: 2, 16, 16>}, {transform_indices = @transform_1, window_bounds = array<i64: 2, 16, 16>}]} {
    %c0 = arith.constant 0 : index
    %c0_0 = arith.constant 0 : index
    %c0_1 = arith.constant 0 : index
    %0 = vector.load %arg1[%c0, %c0_0, %c0_1] : memref<2x16x16xf32, #tpu.memory_space<vmem>>, vector<2x16x16xf32>
    %1 = tpu.iota {dimensions = array<i32: 2>} : vector<2x16x16xi32>
    %c1_i32 = arith.constant 1 : i32
    %2 = tpu.dynamic_rotate %0 by %c1_i32 dim 2 : vector<2x16x16xf32>, i32 -> vector<2x16x16xf32>
    %c15_i32 = arith.constant 15 : i32
    %3 = tpu.dynamic_rotate %0 by %c15_i32 dim 2 : vector<2x16x16xf32>, i32 -> vector<2x16x16xf32>
    %c0_i32 = arith.constant 0 : i32
    %4 = vector.broadcast %c0_i32 : i32 to vector<2x16x16xi32>
    %5 = arith.cmpi eq, %1, %4 : vector<2x16x16xi32>
    %6 = arith.select %5, %3, %2 : vector<2x16x16xi1>, vector<2x16x16xf32>
    %c15_i32_2 = arith.constant 15 : i32
    %7 = vector.broadcast %c15_i32_2 : i32 to vector<2x16x16xi32>
    %8 = arith.cmpi eq, %1, %7 : vector<2x16x16xi32>
    %9 = arith.select %8, %2, %3 : vector<2x16x16xi1>, vector<2x16x16xf32>
    %cst = arith.constant 0.274068624 : f32
    %10 = vector.broadcast %cst : f32 to vector<2x16x16xf32>
    %11 = arith.mulf %10, %6 : vector<2x16x16xf32>
    %cst_3 = arith.constant 0.451862752 : f32
    %12 = vector.broadcast %cst_3 : f32 to vector<2x16x16xf32>
    %13 = arith.mulf %12, %0 : vector<2x16x16xf32>
    %14 = arith.addf %11, %13 : vector<2x16x16xf32>
    %cst_4 = arith.constant 0.274068624 : f32
    %15 = vector.broadcast %cst_4 : f32 to vector<2x16x16xf32>
    %16 = arith.mulf %15, %9 : vector<2x16x16xf32>
    %17 = arith.addf %14, %16 : vector<2x16x16xf32>
    %18 = tpu.iota {dimensions = array<i32: 1>} : vector<2x16x16xi32>
    %c1_i32_5 = arith.constant 1 : i32
    %19 = tpu.dynamic_rotate %17 by %c1_i32_5 dim 1 : vector<2x16x16xf32>, i32 -> vector<2x16x16xf32>
    %c15_i32_6 = arith.constant 15 : i32
    %20 = tpu.dynamic_rotate %17 by %c15_i32_6 dim 1 : vector<2x16x16xf32>, i32 -> vector<2x16x16xf32>
    %c0_i32_7 = arith.constant 0 : i32
    %21 = vector.broadcast %c0_i32_7 : i32 to vector<2x16x16xi32>
    %22 = arith.cmpi eq, %18, %21 : vector<2x16x16xi32>
    %23 = arith.select %22, %20, %19 : vector<2x16x16xi1>, vector<2x16x16xf32>
    %c15_i32_8 = arith.constant 15 : i32
    %24 = vector.broadcast %c15_i32_8 : i32 to vector<2x16x16xi32>
    %25 = arith.cmpi eq, %18, %24 : vector<2x16x16xi32>
    %26 = arith.select %25, %19, %20 : vector<2x16x16xi1>, vector<2x16x16xf32>
    %cst_9 = arith.constant 0.274068624 : f32
    %27 = vector.broadcast %cst_9 : f32 to vector<2x16x16xf32>
    %28 = arith.mulf %27, %23 : vector<2x16x16xf32>
    %cst_10 = arith.constant 0.451862752 : f32
    %29 = vector.broadcast %cst_10 : f32 to vector<2x16x16xf32>
    %30 = arith.mulf %29, %17 : vector<2x16x16xf32>
    %31 = arith.addf %28, %30 : vector<2x16x16xf32>
    %cst_11 = arith.constant 0.274068624 : f32
    %32 = vector.broadcast %cst_11 : f32 to vector<2x16x16xf32>
    %33 = arith.mulf %32, %26 : vector<2x16x16xf32>
    %34 = arith.addf %31, %33 : vector<2x16x16xf32>
    %c0_12 = arith.constant 0 : index
    %c0_13 = arith.constant 0 : index
    %c0_14 = arith.constant 0 : index
    %35 = vector.load %arg2[%c0_12, %c0_13, %c0_14] : memref<2x16x16xf32, #tpu.memory_space<vmem>>, vector<2x16x16xf32>
    tpu.vector_store %arg2[%c0_12, %c0_13, %c0_14], %34 {strides = array<i32>} : memref<2x16x16xf32, #tpu.memory_space<vmem>>, vector<2x16x16xf32>,
    return
  }
  func.func @transform_0(%arg0: i32) -> (i32, i32, i32) {
    %c0_i32 = arith.constant 0 : i32
    %c0_i32_0 = arith.constant 0 : i32
    %c0_i32_1 = arith.constant 0 : i32
    return %arg0, %c0_i32, %c0_i32_0 : i32, i32, i32
  }
  func.func @transform_1(%arg0: i32) -> (i32, i32, i32) {
    %c0_i32 = arith.constant 0 : i32
    %c0_i32_0 = arith.constant 0 : i32
    %c0_i32_1 = arith.constant 0 : i32
    return %arg0, %c0_i32, %c0_i32_0 : i32, i32, i32
  }
}

</mosaic_0001>

<bundles_post_ra>
// kernel: tpu_custom_call.1
= control target key start
LH: loop header
LB: loop body
LE: loop exit
PB: predicated region body
PF: predicated region fallthrough
CT: control target
= control target key end

     0   :  { %6 = vsyncpa [#allocation3], 0  ;;  %s783_s0 = inlined_call_operand.hbm [shape: f32[4,16,16], index: 0, kind: input, shape index: {}]   ;;  %s784_s1 = inlined_call_operand.hbm [shape: f32[4,16,16], index: 1, kind: output, shape index: {}]  }
   0x1   :  { %8 = vsyncpa [#allocation3 + $0x1], 0 }
   0x2   :  { %9 = vsyncpa [#allocation4], 0 }
   0x3   :  { %11 = vsyncpa [#allocation4 + $0x1], 0  ;;  %s563_s6 = smov 0   ;;  %s565_s7 = smov 0  }
   0x4   :  { %s567_s8 = smov 0   ;;  %s569_s9 = smov 0  }
   0x5 LB: > { %s584_s10 = sadd.s32 4294967295, %s542_s9   ;;  %s373_s11 = sadd.s32 4294967294, %s542_s9   ;;  %s542_s9 = sphi %s569_s9, %s797_s9   ;;  %s538_s8 = sphi %s567_s8, %s796_s8   ;;  %s534_s7 = sphi %s565_s7, %s795_s7   ;;  %s530_s6 = sphi %s563_s6, %s794_s6  }
   0x6   : > { %s588_s12 = sadd.s32 1, %s542_s9   ;;  %s24_s13 = sadd.s32 1, %s538_s8 }
   0x7   : > { %s21_s14 = ssub.s32 %s542_s9, %s588_s12  ;;  %p31_p0 = scmp.ne.s32.totalorder %s538_s8, %s534_s7 }
   0x8   : > { %p22_p1 = scmp.eq.s32.totalorder %s21_s14, 0  ;;  %p32_p2 = scmp.eq.s32.totalorder %s542_s9, 0 }
   0x9   : > { %p37_p3 = scmp.ne.s32.totalorder %s534_s7, %s530_s6  ;;  %p38_p4 = scmp.eq.s32.totalorder %s584_s10, 0 }
   0xa   : > { %s600_s15 = scalar_select %p22_p1, %s538_s8, %s24_s13  }
   0xb   : > { %p602_p5 = por %p32_p2, %p31_p0  ;;  %p606_p6 = por %p38_p4, %p37_p3 }
   0xc   : > { %p61_p7 = scmp.eq.s32.totalorder %s584_s10, 1  ;;  %p67_p8 = scmp.eq.s32.totalorder %s373_s11, 1 }
   0xd   : > { %p405_p10 = scmp.lt.s32.totalorder %s542_s9, 2  ;;  %s87_s20 = sand.u32 1, %s538_s8  }
   0xe   : > { %p613_p11 = por %p61_p7, %p31_p0  ;;  %p617_p12 = por %p67_p8, %p37_p3 }
   0xf   : > { %s390_s21 = sshll.u32 %s542_s9, 9  ;;  %s376_s22 = sshll.u32 %s87_s20, 5 }
  0x10   : > { %s788_s18 = scalar_select %p613_p11, 1, 0 }
  0x11   : > { %s789_s19 = scalar_select %p617_p12, 1, 0 }
  0x12   : > { %s626_s25 = scalar_lea.hbm %s783_s0, %s390_s21  ;;  %s91_s26 = scalar_lea.vmem [#allocation2], %s376_s22 }
  0x13   : > { %s99_s27 = sshll.u32 %s91_s26, 4  ;;  %p630_p13 = pnand %p405_p10, %p602_p5  ;;  %s634_s27 = int_to_ptr.vmem [resolvable:$true] %s99_s27 }
  0x14   : > { %s636_s29 = scalar_lea.sflag [#allocation3], %s87_s20  ;;  %s446_s30 = scalar_lea.hbm %s626_s25, 512 }
  0x15   : > { %p447_p0 = scmp.ne.s32.totalorder %s626_s25, %s446_s30  ;;  %p448_p1 = pneg %p630_p13 }
  0x16   : > { %s451_s4 = scalar_lea.hbm %s783_s0, 1024  ;;  %p452_p4 = scmp.lt.u32.totalorder %s626_s25, %s783_s0 }
  0x17   : > { %p449_p2 = pnand %p448_p1, %p447_p0  ;;  %p453_p5 = scmp.lt.u32.totalorder %s451_s4, %s446_s30 }
  0x18   : > { %p455_p8 = scmp.lt.u32.totalorder %s446_s30, %s626_s25 }
  0x19   : > { %p450_p3 = pneg %p449_p2  ;;  %p454_p7 = por %p453_p5, %p452_p4 }
  0x1b   : > { %p456_p10 = por %p455_p8, %p454_p7 }
  0x1d   : > { %p457_p9 = pnand %p456_p10, %p450_p3 }
  0x1f   : > { %460 = shalt.err (!%p457_p9)
}
  0x20   : > { %s461_s13 = scalar_lea.vmem %s634_s27, 512  ;;  %s544_s14 = smov [#allocation2]  }
  0x21   : > { %p462_p0 = scmp.ne.s32.totalorder %s634_s27, %s461_s13  ;;  %s466_s16 = sshll.u32 %s544_s14, 4  ;;  %s467_s16 = int_to_ptr.vmem [resolvable:$false] %s466_s16 }
  0x22   : > { %s468_s20 = scalar_lea.vmem %s467_s16, 1024  ;;  %p469_p11 = scmp.lt.s32.totalorder %s634_s27, %s467_s16 }
  0x23   : > { %p464_p2 = pnand %p462_p0, %p448_p1  ;;  %p470_p4 = scmp.lt.s32.totalorder %s468_s20, %s461_s13 }
  0x25   : > { %p465_p12 = pneg %p464_p2  ;;  %p471_p5 = por %p470_p4, %p469_p11 }
  0x27   : > { %p472_p7 = pnand %p471_p5, %p465_p12 }
  0x29   : > { %475 = shalt.err (!%p472_p7)
}
  0x2a   : > { %s545_s21 = smov 128   ;;  %s546_s22 = smov 8  }
  0x2b   : > { %400 = dma.hbm_to_vmem [thread:$0]  (!%p630_p13), %s626_s25, 512, %s634_s27, %s636_s29, %s545_s21, %s545_s21, %s546_s22  }
  0x2c   : > { %p380_p9 = scmp.ge.s32.totalorder %s542_s9, 1  ;;  %p107_p1 = scmp.lt.s32.totalorder %s542_s9, 3 }
  0x2e   : > { %p108_p3 = pnand %p380_p9, %p107_p1 }
  0x2f   : > { %s667_s23 = sand.u32 (!%p108_p3), 1, %s534_s7  }
  0x30   : > { %111 = sbr.rel (%p108_p3) target bundleno = 453 (0x1c5), region = 24  ;;  %s381_s24 = sshll.u32 (!%p108_p3), %s667_s23, 5 }
  0x31   : > { %s114_s26 = scalar_lea.sflag (!%p108_p3), [#allocation3], %s667_s23  ;;  %s117_s30 = scalar_lea.vmem (!%p108_p3), [#allocation2], %s381_s24 }
  0x37   : > { %521 = dma.done.wait (%p606_p6), %s114_s26, 512  }
  0x38   : > { %523 = vsyncadd (%p606_p6), %s114_s26, 4294966784  ;;  %v138_v0 = vld [vmem:[%s117_s30] sm:$0xff]  ;;  %v140_v1 = vld [vmem:[%s117_s30 + $0x10] sm:$0xff]  ;;  %s547_s25 = smov 16   ;;  %vm144_vm0 = vcmask 1047680   ;;  %s548_s17 = smov 127   ;;  %v142_v20 = vlaneseq }
  0x39   : > { %145 = vrot.lane.b32.xlu0 %v138_v0, %s547_s25  ;;  %151 = vrot.lane.b32.xlu1 %v140_v1, %s547_s25  ;;  %v139_v2 = vld [vmem:[%s117_s30 + $0x8] sm:$0xff]  ;;  %v677_v3 = vld [vmem:[%s117_s30 + $0x18] sm:$0xff]  ;;  %s549_s27 = smov 113   ;;  %v211_v27 = vmul.f32 0.45186275, %v138_v0  ;;  %vm280_vm7 = vcmask 130048  }
  0x3a   : > { %v143_v22 = vand.u32 127, %v142_v20  ;;  %v692_v31 = vshrl.u32 %v142_v20, 7  ;;  %v212_v33 = vmul.f32 0.45186275, %v139_v2  ;;  %v213_v35 = vmul.f32 0.45186275, %v140_v1 }
  0x3b   : > { %v214_v48 = vmul.f32 0.45186275, %v677_v3  ;;  %s135_s28 = scalar_lea.vmem [#allocation5], %s381_s24  ;;  %s392_s29 = sshll.u32 %s584_s10, 9 }
  0x3c   : > { %vm169_vm1 = vcmp.eq.s32.totalorder %v143_v22, 0  ;;  %vm202_vm2 = vcmp.eq.s32.totalorder %v143_v22, 15  ;;  %v229_v44 = vadd.s32 8, %v692_v31  ;;  %vm234_vm3 = vcmp.lt.s32.totalorder %v692_v31, 1  ;;  %s300_s2 = sshll.u32 %s135_s28, 4  ;;  %s735_s5 = scalar_lea.hbm %s784_s1, %s392_s29  ;;  %s737_s2 = int_to_ptr.vmem [resolvable:$true] %s300_s2 }
  0x3d   : > { %148 = vrot.lane.b32.xlu0 %v139_v2, %s547_s25  ;;  %154 = vrot.lane.b32.xlu1 %v677_v3, %s547_s25  ;;  %vm243_vm4 = vcmp.lt.s32.totalorder %v692_v31, 7  ;;  %vm248_vm5 = vcmp.eq.s32.totalorder %v692_v31, 0  ;;  %s286_s10 = scalar_lea.sflag [#allocation4], %s667_s23  ;;  %s476_s11 = scalar_lea.vmem %s737_s2, 512 }
  0x3e   : > { %vm255_vm6 = vcmp.eq.s32.totalorder %v229_v44, 15  ;;  %p477_p6 = scmp.ne.s32.totalorder %s737_s2, %s476_s11  ;;  %p791_p11 = scmp.ne.s32.totalorder %s788_s18, 0 }
  0x3f   : > { %s550_s13 = smov [#allocation5]  }
  0x40   : > { %p478_p12 = pnand %p477_p6, %p791_p11  ;;  %s480_s14 = sshll.u32 %s550_s13, 4  ;;  %s481_s14 = int_to_ptr.vmem [resolvable:$false] %s480_s14 }
  0x41   : > { %s482_s16 = scalar_lea.vmem %s481_s14, 1024  ;;  %p483_p8 = scmp.lt.s32.totalorder %s737_s2, %s481_s14 }
  0x42   : > { %p479_p13 = pneg %p478_p12  ;;  %p484_p10 = scmp.lt.s32.totalorder %s482_s16, %s476_s11 }
  0x44   : > { %p485_p0 = por %p484_p10, %p483_p8 }
  0x46   : > { %p486_p2 = pnand %p485_p0, %p479_p13 }
  0xab   : > { %v146_v4 = vpop.permute.xlu0 %145  ;;  %v152_v5 = vpop.permute.xlu1 %151 }
  0xac   : > { %v147_v6 = vsel %vm144_vm0, %v146_v4, %v138_v0  ;;  %v153_v7 = vsel %vm144_vm0, %v152_v5, %v140_v1 }
  0xad   : > { %157 = vrot.lane.b32.xlu0 %v147_v6, %s547_s25 }
  0xaf   : > { %v149_v8 = vpop.permute.xlu0 %148  ;;  %v155_v9 = vpop.permute.xlu1 %154 }
  0xb0   : > { %v150_v10 = vsel %vm144_vm0, %v149_v8, %v139_v2  ;;  %v156_v11 = vsel %vm144_vm0, %v155_v9, %v677_v3 }
  0xb1   : > { %161 = vrot.lane.b32.xlu0 %v153_v7, %s547_s25  ;;  %159 = vrot.lane.b32.xlu1 %v150_v10, %s547_s25 }
  0xb5   : > { %163 = vrot.lane.b32.xlu1 %v156_v11, %s547_s25 }
 0x11f   : > { %v158_v12 = vpop.permute.xlu0 %157 }
 0x120   : > { %v165_v13 = vsel %vm144_vm0, %v158_v12, %v138_v0 }
 0x121   : > { %174 = vrot.lane.b32.xlu0 %v165_v13, %s548_s17 }
 0x123   : > { %v160_v14 = vpop.permute.xlu1 %159  ;;  %v162_v15 = vpop.permute.xlu0 %161 }
 0x124   : > { %v166_v16 = vsel %vm144_vm0, %v160_v14, %v139_v2  ;;  %v167_v17 = vsel %vm144_vm0, %v162_v15, %v140_v1 }
 0x125   : > { %176 = vrot.lane.b32.xlu1 %v166_v16, %s548_s17  ;;  %178 = vrot.lane.b32.xlu0 %v167_v17, %s548_s17 }
 0x127   : > { %v164_v18 = vpop.permute.xlu1 %163 }
 0x128   : > { %v168_v19 = vsel %vm144_vm0, %v164_v18, %v677_v3 }
 0x129   : > { %180 = vrot.lane.b32.xlu1 %v168_v19, %s548_s17  ;;  %186 = vrot.lane.b32.xlu0 %v165_v13, %s549_s27 }
 0x12d   : > { %188 = vrot.lane.b32.xlu1 %v166_v16, %s549_s27  ;;  %190 = vrot.lane.b32.xlu0 %v167_v17, %s549_s27 }
 0x131   : > { %192 = vrot.lane.b32.xlu1 %v168_v19, %s549_s27 }
 0x193   : > { %v175_v21 = vpop.permute.xlu0 %174 }
 0x197   : > { %v177_v23 = vpop.permute.xlu1 %176  ;;  %v179_v24 = vpop.permute.xlu0 %178 }
 0x19b   : > { %v181_v25 = vpop.permute.xlu1 %180  ;;  %v187_v26 = vpop.permute.xlu0 %186 }
 0x19c   : > { %v198_v28 = vsel %vm169_vm1, %v175_v21, %v187_v26  ;;  %v203_v29 = vsel %vm202_vm2, %v187_v26, %v175_v21 }
 0x19d   : > { %v207_v30 = vmul.f32 0.27406862, %v198_v28  ;;  %v219_v37 = vmul.f32 0.27406862, %v203_v29 }
 0x19f   : > { %v215_v32 = vadd.f32 %v211_v27, %v207_v30  ;;  %v189_v34 = vpop.permute.xlu1 %188  ;;  %v191_v36 = vpop.permute.xlu0 %190 }
 0x1a0   : > { %v199_v38 = vsel %vm169_vm1, %v177_v23, %v189_v34  ;;  %v204_v39 = vsel %vm202_vm2, %v189_v34, %v177_v23  ;;  %v200_v40 = vsel %vm169_vm1, %v179_v24, %v191_v36  ;;  %v205_v47 = vsel %vm202_vm2, %v191_v36, %v179_v24 }
 0x1a1   : > { %v208_v41 = vmul.f32 0.27406862, %v199_v38  ;;  %v209_v42 = vmul.f32 0.27406862, %v200_v40  ;;  %v223_v43 = vadd.f32 %v219_v37, %v215_v32  ;;  %v220_v46 = vmul.f32 0.27406862, %v204_v39 }
 0x1a2   : > { %v221_v56 = vmul.f32 0.27406862, %v205_v47 }
 0x1a3   : > { %v216_v45 = vadd.f32 %v212_v33, %v208_v41  ;;  %v193_v49 = vpop.permute.xlu1 %192  ;;  %v217_v50 = vadd.f32 %v213_v35, %v209_v42  ;;  %v230_v55 = vrot.slane %v223_v43, 7  ;;  %v239_v57 = vrot.slane %v223_v43, 1 }
 0x1a4   : > { %v201_v51 = vsel %vm169_vm1, %v181_v25, %v193_v49  ;;  %v206_v53 = vsel %vm202_vm2, %v193_v49, %v181_v25  ;;  %v264_v7 = vmul.f32 0.45186275, %v223_v43 }
 0x1a5   : > { %v224_v52 = vadd.f32 %v220_v46, %v216_v45  ;;  %v210_v54 = vmul.f32 0.27406862, %v201_v51  ;;  %v225_v61 = vadd.f32 %v221_v56, %v217_v50  ;;  %v222_v62 = vmul.f32 0.27406862, %v206_v53 }
 0x1a7   : > { %v232_v58 = vrot.slane %v224_v52, 7  ;;  %v241_v59 = vrot.slane %v224_v52, 1  ;;  %v218_v60 = vadd.f32 %v214_v48, %v210_v54  ;;  %v265_v6 = vmul.f32 0.45186275, %v224_v52 }
 0x1a8   : > { %v231_v12 = vrot.slane %v225_v61, 7  ;;  %v240_v13 = vrot.slane %v225_v61, 1  ;;  %v266_v27 = vmul.f32 0.45186275, %v225_v61 }
 0x1a9   : > { %v235_v63 = vsel %vm234_vm3, %v230_v55, %v232_v58  ;;  %v237_v0 = vsel %vm234_vm3, %v232_v58, %v230_v55  ;;  %v244_v1 = vsel %vm243_vm4, %v239_v57, %v241_v59  ;;  %v246_v2 = vsel %vm243_vm4, %v241_v59, %v239_v57 }
 0x1aa   : > { %v250_v3 = vsel %vm248_vm5, %v244_v1, %v237_v0  ;;  %v257_v4 = vsel %vm255_vm6, %v235_v63, %v246_v2  ;;  %v261_v5 = vmul.f32 0.27406862, %v235_v63  ;;  %v226_v10 = vadd.f32 %v222_v62, %v218_v60 }
 0x1ab   : > { %v260_v8 = vmul.f32 0.27406862, %v250_v3  ;;  %v273_v9 = vmul.f32 0.27406862, %v257_v4  ;;  %v272_v15 = vmul.f32 0.27406862, %v244_v1 }
 0x1ac   : > { %v269_v11 = vadd.f32 %v265_v6, %v261_v5  ;;  %v233_v16 = vrot.slane %v226_v10, 7  ;;  %v242_v17 = vrot.slane %v226_v10, 1  ;;  %v267_v26 = vmul.f32 0.45186275, %v226_v10 }
 0x1ad   : > { %v268_v14 = vadd.f32 %v264_v7, %v260_v8 }
 0x1ae   : > { %v277_v18 = vadd.f32 %v273_v9, %v269_v11  ;;  %v236_v20 = vsel %vm234_vm3, %v231_v12, %v233_v16  ;;  %v238_v21 = vsel %vm234_vm3, %v233_v16, %v231_v12  ;;  %v245_v22 = vsel %vm243_vm4, %v240_v13, %v242_v17 }
 0x1af   : > { %v276_v19 = vadd.f32 %v272_v15, %v268_v14  ;;  %v247_v23 = vsel %vm243_vm4, %v242_v17, %v240_v13  ;;  %v252_v24 = vsel %vm248_vm5, %v245_v22, %v238_v21  ;;  %v263_v25 = vmul.f32 0.27406862, %v236_v20 }
 0x1b0   : > { %282 = vst.msk [vmem:[%s135_s28 + $0x8] sm:$0xff] %vm280_vm7, %v277_v18  ;;  %v259_v28 = vsel %vm255_vm6, %v236_v20, %v247_v23  ;;  %v262_v29 = vmul.f32 0.27406862, %v252_v24  ;;  %v274_v34 = vmul.f32 0.27406862, %v245_v22 }
 0x1b1   : > { %281 = vst.msk [vmem:[%s135_s28] sm:$0xff] %vm280_vm7, %v276_v19  ;;  %v271_v30 = vadd.f32 %v267_v26, %v263_v25  ;;  %v275_v32 = vmul.f32 0.27406862, %v259_v28 }
 0x1b2   : > { %v270_v33 = vadd.f32 %v266_v27, %v262_v29 }
 0x1b3   : > { %v279_v35 = vadd.f32 %v275_v32, %v271_v30 }
 0x1b4   : > { %v278_v31 = vadd.f32 %v274_v34, %v270_v33 }
 0x1b5   : > { %284 = vst.msk [vmem:[%s135_s28 + $0x18] sm:$0xff] %vm280_vm7, %v279_v35 }
 0x1b6   : > { %283 = vst.msk [vmem:[%s135_s28 + $0x10] sm:$0xff] %vm280_vm7, %v278_v31 }
 0x1b7   : > { %489 = shalt.err (!%p486_p2)
}
 0x1b8   : > { %s490_s20 = scalar_lea.hbm %s735_s5, 512  ;;  %s494_s24 = scalar_lea.hbm %s784_s1, 1024 }
 0x1b9   : > { %p491_p4 = scmp.ne.s32.totalorder %s735_s5, %s490_s20  ;;  %p495_p9 = scmp.lt.u32.totalorder %s735_s5, %s784_s1 }
 0x1ba   : > { %p496_p1 = scmp.lt.u32.totalorder %s494_s24, %s490_s20  ;;  %p498_p6 = scmp.lt.u32.totalorder %s490_s20, %s735_s5 }
 0x1bb   : > { %p492_p5 = pnand %p491_p4, %p791_p11 }
 0x1bc   : > { %p497_p3 = por %p496_p1, %p495_p9 }
 0x1bd   : > { %p493_p7 = pneg %p492_p5 }
 0x1be   : > { %p499_p12 = por %p498_p6, %p497_p3 }
 0x1c0   : > { %p500_p13 = pnand %p499_p12, %p493_p7 }
 0x1c2   : > { %503 = shalt.err (!%p500_p13)
}
 0x1c3   : > { %s551_s25 = smov 128   ;;  %s552_s17 = smov 8  }
 0x1c4   : > { %395 = dma.vmem_to_hbm [thread:$0]  (%p791_p11), %s737_s2, 512, %s735_s5, %s286_s10, %s551_s25, %s551_s25, %s552_s17  }
 0x1c5 PF: > { %s315_s27 = sand.u32 1, %s530_s6   ;;  %p792_p8 = scmp.ne.s32.totalorder %s789_s19, 0 }
 0x1c6   : > { %p793_p10 = scmp.ge.s32.totalorder %s542_s9, 2  ;;  %s316_s28 = scalar_lea.sflag [#allocation4], %s315_s27 }
 0x1c8   : > { %p402_p0 = pnand %p793_p10, %p792_p8 }
 0x1ca   : > { %525 = dma.done.wait (!%p402_p0), %s316_s28, 512  }
 0x1cb   : > { %527 = vsyncadd (!%p402_p0), %s316_s28, 4294966784  ;;  %p14_p2 = scmp.ge.s32.totalorder %s588_s12, 4   ;;  %s794_s6 = smov %s534_s7 }
 0x1cc   : > { %s795_s7 = smov %s538_s8  ;;  %s796_s8 = smov %s600_s15 }
 0x1cd   : > { %s797_s9 = smov %s588_s12  ;;  %16 = sbr.rel (!%p14_p2) target bundleno = 5 (0x5), region = 69 }
 0x1d4   :  { %321 = vsyncpa [#allocation3], 1 }
 0x1d5   :  { %323 = vsyncpa [#allocation3 + $0x1], 1 }
 0x1d6   :  { %324 = vsyncpa [#allocation4], 1 }
 0x1d7   :  { %326 = vsyncpa [#allocation4 + $0x1], 1 }

</bundles_post_ra>
